<compile_context>
chip_gen: v7x
topology: tpu7x:2x2x1
jax: 0.10.0
libtpu: 0.0.40
codegen_flags: <defaults>
</compile_context>

<pallas_src>
import jax
import jax.numpy as jnp
from jax.experimental import pallas as pl
from jax.experimental.pallas import tpu as pltpu

LANE = 128          # vreg lane width: H / Dout padded (once) to multiples of this
ROW_ALIGN = 16      # batch-tile multiple (covers f32 and bf16 sublane packing)


def _round_up(n, m):
    return ((n + m - 1) // m) * m


# --------------------------------------------------------------------------
# Kernel: one (TB, Din) batch tile of   o = relu(x @ W1 + b1) @ W2 + b2
# --------------------------------------------------------------------------
def _mlp_kernel(x_ref, w1_ref, w2_ref, bias_ref, o_ref):
    hp = w1_ref.shape[1]       # padded hidden width  (multiple of 128)
    dp_out = w2_ref.shape[1]   # padded output width  (multiple of 128)

    # x arrives f32 straight from HBM (no padded copy); cast to bf16 in-vreg
    # for the MXU.  Accumulation / bias-add / ReLU stay f32 on the VPU.
    x = x_ref[...].astype(jnp.bfloat16)
    h = jnp.dot(x, w1_ref[...], preferred_element_type=jnp.float32)
    h = h + bias_ref[0:1, :hp]            # (1, Hp) broadcasts over batch rows
    h = jnp.maximum(h, 0.0)

    o = jnp.dot(h.astype(w2_ref.dtype), w2_ref[...],
                preferred_element_type=jnp.float32)
    o = o + bias_ref[1:2, :dp_out]
    o_ref[...] = o.astype(o_ref.dtype)    # lane-dense (Dp_out = k*128) full vst


# --------------------------------------------------------------------------
# One-time parameter preparation (hoisted out of the forward path)
# --------------------------------------------------------------------------
def _pad_mlp_params(w1, b1, w2, b2):
    """Pad H/Dout to 128 lanes, cast weights to bf16, pack biases.

    Din is left unpadded (it equals the full array dim for the x BlockSpec).
    Returns (w1p, w2p, biases) ready to be passed to mlp_forward_pallas.
    """
    d_in, h = w1.shape
    d_out = w2.shape[1]
    hp = _round_up(h, LANE)
    dp_out = _round_up(d_out, LANE)

    w1p = jnp.zeros((d_in, hp), jnp.bfloat16).at[:, :h].set(
        w1.astype(jnp.bfloat16))
    w2p = jnp.zeros((hp, dp_out), jnp.bfloat16).at[:h, :d_out].set(
        w2.astype(jnp.bfloat16))

    # Both biases packed into one small 128-aligned f32 array (single DMA,
    # VMEM-resident across the grid): row 0 = b1, row 1 = b2.
    p = max(hp, dp_out)
    biases = jnp.zeros((8, p), jnp.float32)
    biases = biases.at[0, :h].set(b1.reshape(-1).astype(jnp.float32))
    biases = biases.at[1, :d_out].set(b2.reshape(-1).astype(jnp.float32))
    return w1p, w2p, biases


# --------------------------------------------------------------------------
# Forward wrapper around pallas_call
# --------------------------------------------------------------------------
def mlp_forward_pallas(x, w1p, w2p, biases, d_out, *, batch_tile=1024):
    """Fused MLP forward using pre-padded parameters.

    x: (B, Din) f32/bf16.  w1p: (Din, Hp) bf16.  w2p: (Hp, Dp_out) bf16.
    biases: (8, max(Hp, Dp_out)) f32 (row0=b1, row1=b2).  Returns (B, d_out).
    """
    B, d_in = x.shape
    hp = w1p.shape[1]
    dp_out = w2p.shape[1]
    p = biases.shape[1]
    out_dtype = x.dtype

    # --- batch tile: big tiles to amortize per-step overhead, but keep the
    # --- grid length >= 2 when possible so "parallel" can use both v7x TCs.
    bp_min = _round_up(B, ROW_ALIGN)
    if bp_min <= ROW_ALIGN:
        tb = bp_min
    else:
        tb = min(_round_up(batch_tile, ROW_ALIGN),
                 _round_up(pl.cdiv(bp_min, 2), ROW_ALIGN))
    bp = _round_up(B, tb)
    grid = (bp // tb,)

    # Batch-only padding (no Din inflation, no full zero-init + scatter).
    x_in = x if bp == B else jnp.pad(x, ((0, bp - B), (0, 0)))

    # Advisory cost estimate on real traffic (unpadded batch / Din).
    flops = 2 * B * (d_in * hp + hp * dp_out)
    bytes_accessed = (B * d_in * jnp.dtype(x.dtype).itemsize
                      + w1p.size * 2 + w2p.size * 2 + biases.size * 4
                      + bp * dp_out * jnp.dtype(out_dtype).itemsize)

    out_padded = pl.pallas_call(
        _mlp_kernel,
        out_shape=jax.ShapeDtypeStruct((bp, dp_out), out_dtype),
        grid_spec=pltpu.PrefetchScalarGridSpec(
            num_scalar_prefetch=0,
            grid=grid,
            in_specs=[
                # x: tiled over batch; last dim == full array dim (Din), so no
                # 128-lane padding / HBM copy is needed for the input stream.
                pl.BlockSpec((tb, d_in), lambda i: (i, 0)),
                pl.BlockSpec((d_in, hp), lambda i: (0, 0)),    # W1: VMEM-resident
                pl.BlockSpec((hp, dp_out), lambda i: (0, 0)),  # W2: VMEM-resident
                pl.BlockSpec((8, p), lambda i: (0, 0)),        # packed biases
            ],
            out_specs=pl.BlockSpec((tb, dp_out), lambda i: (i, 0)),
        ),
        compiler_params=pltpu.CompilerParams(
            dimension_semantics=("parallel",)),                # v7x: 2-TC batch shard
        cost_estimate=pl.CostEstimate(
            flops=flops, transcendentals=0, bytes_accessed=bytes_accessed),
    )(x_in, w1p, w2p, biases)

    return out_padded[:B, :d_out]


# --------------------------------------------------------------------------
# Modules
# --------------------------------------------------------------------------
class InnerMLP:
    """Deterministic inner module: Linear(Din->H) -> ReLU -> Linear(H->Dout)."""

    def __init__(self, key, d_in=32, d_hidden=64, d_out=32, dtype=jnp.float32):
        k1, k2, k3, k4 = jax.random.split(key, 4)
        self.w1 = (jax.random.normal(k1, (d_in, d_hidden), dtype) *
                   (2.0 / d_in) ** 0.5)
        self.b1 = jax.random.normal(k2, (1, d_hidden), dtype) * 0.01
        self.w2 = (jax.random.normal(k3, (d_hidden, d_out), dtype) *
                   (2.0 / d_hidden) ** 0.5)
        self.b2 = jax.random.normal(k4, (1, d_out), dtype) * 0.01
        self.d_out = d_out

        # One-time padding / bf16 cast of the kernel parameters (hoisted out
        # of the forward path -- the main perf-review item).
        self.w1p, self.w2p, self.biases = _pad_mlp_params(
            self.w1, self.b1, self.w2, self.b2)

    def __call__(self, x):
        return mlp_forward_pallas(x, self.w1p, self.w2p, self.biases,
                                  self.d_out)


class MetaLearner:
    """JAX equivalent of the torch MetaLearner wrapper.

    forward(*args, **kwargs) delegates to the wrapped module; attribute access
    falls through to the wrapped module (mirrors torch __getattr__).
    """

    def __init__(self, module=None):
        self.__dict__["module"] = module

    def __getattr__(self, attr):
        return getattr(self.__dict__["module"], attr)

    def forward(self, *args, **kwargs):
        return self.module(*args, **kwargs)

    def __call__(self, *args, **kwargs):
        return self.forward(*args, **kwargs)


def _reference_forward(x, m: InnerMLP):
    # Same numerics as the kernel: bf16 matmul inputs, f32 accumulation,
    # f32 bias-add / ReLU.  (bf16 MXU inputs are an intentional precision
    # trade-off vs a pure-f32 torch forward.)
    xb = x.astype(jnp.bfloat16)
    w1b = m.w1.astype(jnp.bfloat16)
    w2b = m.w2.astype(jnp.bfloat16)
    h = jnp.dot(xb, w1b, preferred_element_type=jnp.float32) + m.b1
    h = jnp.maximum(h, 0.0)
    o = jnp.dot(h.astype(jnp.bfloat16), w2b,
                preferred_element_type=jnp.float32) + m.b2
    return o.astype(x.dtype)


if __name__ == "__main__":
    key = jax.random.PRNGKey(0)
    k_param, k_x = jax.random.split(key)

    inner = InnerMLP(k_param, d_in=32, d_hidden=64, d_out=32)
    meta = MetaLearner(inner)

    # batch=256 -> tile 128, grid=(2,): exercises the pipelined batch tiling
    # and keeps >=2 grid steps for v7x dual-TC sharding while staying small.
    x = jax.random.normal(k_x, (256, 32), jnp.float32)

    out = meta(x)                       # MetaLearner.forward -> inner -> Pallas kernel
    out = jax.block_until_ready(out)

    ref = _reference_forward(x, inner)
    assert out.shape == (256, 32)
    assert jnp.allclose(out, ref, atol=1e-3, rtol=1e-3), "mismatch vs reference"

    # attribute fallthrough check (mirrors torch __getattr__ semantics)
    assert meta.w1.shape == (32, 64)

    print("KERNEL_OK")
</pallas_src>

<mosaic_0001>
module attributes {stable_mosaic.version = 11 : i64} {
  func.func @_mlp_kernel(%arg0: i32, %arg1: memref<128x32xf32, #tpu.memory_space<vmem>>, %arg2: memref<32x128xbf16, #tpu.memory_space<vmem>>, %arg3: memref<128x128xbf16, #tpu.memory_space<vmem>>, %arg4: memref<8x128xf32, #tpu.memory_space<vmem>>, %arg5: memref<128x128xf32, #tpu.memory_space<vmem>>) attributes {dimension_semantics = [#tpu.dimension_semantics<parallel>], iteration_bounds = array<i64: 2>, scalar_prefetch = 0 : i64, scratch_operands = 0 : i64, tpu.core_type = #tpu.core_type<tc>, window_params = [{transform_indices = @transform_0, window_bounds = array<i64: 128, 32>}, {pipeline_mode = #tpu.pipeline_mode<synchronous>, transform_indices = @transform_1, window_bounds = array<i64: 32, 128>}, {pipeline_mode = #tpu.pipeline_mode<synchronous>, transform_indices = @transform_2, window_bounds = array<i64: 128, 128>}, {pipeline_mode = #tpu.pipeline_mode<synchronous>, transform_indices = @transform_3, window_bounds = array<i64: 8, 128>}, {transform_indices = @transform_4, window_bounds = array<i64: 128, 128>}]} {
    %c0 = arith.constant 0 : index
    %c0_0 = arith.constant 0 : index
    %0 = vector.load %arg1[%c0, %c0_0] : memref<128x32xf32, #tpu.memory_space<vmem>>, vector<128x32xf32>
    %1 = arith.truncf %0 : vector<128x32xf32> to vector<128x32xbf16>
    %c0_1 = arith.constant 0 : index
    %c0_2 = arith.constant 0 : index
    %2 = vector.load %arg2[%c0_1, %c0_2] : memref<32x128xbf16, #tpu.memory_space<vmem>>, vector<32x128xbf16>
    %cst = arith.constant dense<0.000000e+00> : vector<128x128xf32>
    %3 = tpu.matmul %1, %2, %cst {dimension_numbers = #tpu.dot_dimension_numbers<[1], [0], [0], [1], [0, 0, 1, 1], [], []>} : vector<128x32xbf16>, vector<32x128xbf16>, vector<128x128xf32> -> vector<128x128xf32>
    %c0_3 = arith.constant 0 : index
    %c0_4 = arith.constant 0 : index
    %4 = vector.load %arg4[%c0_3, %c0_4] : memref<8x128xf32, #tpu.memory_space<vmem>>, vector<1x128xf32>
    %5 = vector.broadcast %4 : vector<1x128xf32> to vector<128x128xf32>
    %6 = arith.addf %3, %5 : vector<128x128xf32>
    %cst_5 = arith.constant 0.000000e+00 : f32
    %7 = vector.broadcast %cst_5 : f32 to vector<128x128xf32>
    %8 = arith.maximumf %6, %7 : vector<128x128xf32>
    %9 = arith.truncf %8 : vector<128x128xf32> to vector<128x128xbf16>
    %c0_6 = arith.constant 0 : index
    %c0_7 = arith.constant 0 : index
    %10 = vector.load %arg3[%c0_6, %c0_7] : memref<128x128xbf16, #tpu.memory_space<vmem>>, vector<128x128xbf16>
    %cst_8 = arith.constant dense<0.000000e+00> : vector<128x128xf32>
    %11 = tpu.matmul %9, %10, %cst_8 {dimension_numbers = #tpu.dot_dimension_numbers<[1], [0], [0], [1], [0, 0, 1, 1], [], []>} : vector<128x128xbf16>, vector<128x128xbf16>, vector<128x128xf32> -> vector<128x128xf32>
    %c1 = arith.constant 1 : index
    %c0_9 = arith.constant 0 : index
    %12 = vector.load %arg4[%c1, %c0_9] : memref<8x128xf32, #tpu.memory_space<vmem>>, vector<1x128xf32>
    %13 = vector.broadcast %12 : vector<1x128xf32> to vector<128x128xf32>
    %14 = arith.addf %11, %13 : vector<128x128xf32>
    %c0_10 = arith.constant 0 : index
    %c0_11 = arith.constant 0 : index
    %15 = vector.load %arg5[%c0_10, %c0_11] : memref<128x128xf32, #tpu.memory_space<vmem>>, vector<128x128xf32>
    tpu.vector_store %arg5[%c0_10, %c0_11], %14 {strides = array<i32>} : memref<128x128xf32, #tpu.memory_space<vmem>>, vector<128x128xf32>,
    return
  }
  func.func @transform_0(%arg0: i32) -> (i32, i32) {
    %c0_i32 = arith.constant 0 : i32
    %c0_i32_0 = arith.constant 0 : i32
    return %arg0, %c0_i32 : i32, i32
  }
  func.func @transform_1(%arg0: i32) -> (i32, i32) {
    %c0_i32 = arith.constant 0 : i32
    %c0_i32_0 = arith.constant 0 : i32
    %c0_i32_1 = arith.constant 0 : i32
    return %c0_i32, %c0_i32_0 : i32, i32
  }
  func.func @transform_2(%arg0: i32) -> (i32, i32) {
    %c0_i32 = arith.constant 0 : i32
    %c0_i32_0 = arith.constant 0 : i32
    %c0_i32_1 = arith.constant 0 : i32
    return %c0_i32, %c0_i32_0 : i32, i32
  }
  func.func @transform_3(%arg0: i32) -> (i32, i32) {
    %c0_i32 = arith.constant 0 : i32
    %c0_i32_0 = arith.constant 0 : i32
    %c0_i32_1 = arith.constant 0 : i32
    return %c0_i32, %c0_i32_0 : i32, i32
  }
  func.func @transform_4(%arg0: i32) -> (i32, i32) {
    %c0_i32 = arith.constant 0 : i32
    %c0_i32_0 = arith.constant 0 : i32
    return %arg0, %c0_i32 : i32, i32
  }
}

</mosaic_0001>

<bundles_post_ra>
// kernel: tpu_custom_call.1
= control target key start
LH: loop header
LB: loop body
LE: loop exit
PB: predicated region body
PF: predicated region fallthrough
CT: control target
= control target key end

     0   :  { %9 = vsyncpa [#allocation3], 0  ;;  %s1106_s0 = inlined_call_operand.vmem [shape: f32[256,32], index: 0, kind: input, shape index: {}]   ;;  %s1107_s1 = inlined_call_operand.vmem [shape: bf16[32,128], index: 1, kind: input, shape index: {}]   ;;  %s1108_s2 = inlined_call_operand.vmem [shape: bf16[128,128], index: 2, kind: input, shape index: {}]   ;;  %s1109_s3 = inlined_call_operand.vmem [shape: f32[8,128], index: 3, kind: input, shape index: {}]   ;;  %s1110_s4 = inlined_call_operand.hbm [shape: f32[256,128], index: 4, kind: output, shape index: {}]  }
   0x1   :  { %11 = vsyncpa [#allocation3 + $0x1], 0  ;;  %s919_s15 = smov 0   ;;  %s921_s16 = smov 0  }
   0x2   :  { %s923_s17 = smov 0   ;;  %s925_s18 = smov 0  }
   0x3 LB: > { %s940_s19 = sadd.s32 4294967295, %s889_s18   ;;  %s649_s20 = sadd.s32 4294967294, %s889_s18   ;;  %s889_s18 = sphi %s925_s18, %s1116_s18   ;;  %s885_s17 = sphi %s923_s17, %s1115_s17   ;;  %s881_s16 = sphi %s921_s16, %s1114_s16   ;;  %s877_s15 = sphi %s919_s15, %s1113_s15  }
   0x4   : > { %s944_s21 = sadd.s32 1, %s889_s18   ;;  %s113_s22 = sadd.s32 1, %s885_s17 }
   0x5   : > { %s110_s23 = ssub.s32 %s889_s18, %s944_s21  ;;  %p123_p0 = scmp.ne.s32.totalorder %s885_s17, %s881_s16 }
   0x6   : > { %p111_p1 = scmp.eq.s32.totalorder %s110_s23, 0  ;;  %p124_p2 = scmp.eq.s32.totalorder %s940_s19, 1 }
   0x7   : > { %p129_p3 = scmp.ne.s32.totalorder %s881_s16, %s877_s15  ;;  %p130_p4 = scmp.eq.s32.totalorder %s649_s20, 1 }
   0x8   : > { %s955_s24 = scalar_select %p111_p1, %s885_s17, %s113_s22  }
   0x9   : > { %p957_p5 = por %p124_p2, %p123_p0  ;;  %p961_p6 = por %p130_p4, %p129_p3 }
   0xa   : > { %p652_p7 = scmp.ge.s32.totalorder %s889_s18, 1  ;;  %p166_p8 = scmp.lt.s32.totalorder %s889_s18, 3 }
   0xc   : > { %p167_p9 = pnand %p652_p7, %p166_p8 }
   0xd   : > { %v817_v0 = vld [vmem:[%s1107_s1] sm:$0xff] (!%p167_p9)   ;;  %s654_s29 = sshll.u32 (!%p167_p9), %s940_s19, 4  ;;  %v818_v1 = vld [vmem:[%s1107_s1 + $0x8] sm:$0xff] (!%p167_p9)   ;;  %v821_v4 = vld [vmem:[%s1108_s2 + $0x10] sm:$0xff] (!%p167_p9)   ;;  %vm245_vm0 = vcmask (!%p167_p9), 261120   ;;  %s189_s11 = sand.u32 (!%p167_p9), 1, %s881_s16  }
   0xe   : > { %170 = sbr.rel (%p167_p9) target bundleno = 506 (0x1fa), region = 36  ;;  %p193_p10 = scmp.lt.s32.totalorder (!%p167_p9), %s654_s29, 31  ;;  %708 = vmatprep.subr.bf16.mxu0 (!%p167_p9), %v817_v0  ;;  %v819_v2 = vld [vmem:[%s1108_s2] sm:$0xff] (!%p167_p9)   ;;  %v820_v3 = vld [vmem:[%s1108_s2 + $0x8] sm:$0xff] (!%p167_p9)   ;;  %v822_v16 = vld [vmem:[%s1108_s2 + $0x18] sm:$0xff] (!%p167_p9)  }
   0xf   : > { %709 = vmatpush3.bf16.msra.mxu0 (!%p167_p9), %v817_v0  ;;  %760 = vmatprep.subr.bf16.mxu1 (!%p167_p9), %v819_v2  ;;  %v823_v21 = vld [vmem:[%s1108_s2 + $0x20] sm:$0xff] (!%p167_p9)   ;;  %v824_v24 = vld [vmem:[%s1108_s2 + $0x28] sm:$0xff] (!%p167_p9)   ;;  %v825_v32 = vld [vmem:[%s1108_s2 + $0x30] sm:$0xff] (!%p167_p9)   ;;  %s653_s12 = sshll.u32 (!%p167_p9), %s189_s11, 7  ;;  %s681_s22 = sshll.u32 (!%p167_p9), %s940_s19, 11 }
  0x10   : > { %710 = vmatprep.subr.bf16.mxu0 (!%p167_p9), %v818_v1  ;;  %768 = vmatpush3.bf16.msra.mxu1 (!%p167_p9), %v819_v2  ;;  %v826_v33 = vld [vmem:[%s1108_s2 + $0x38] sm:$0xff] (!%p167_p9)   ;;  %v656_v34 = vld [vmem:[%s1109_s3] ss:$0 sm:$0xff] (!%p167_p9)  ;;  %s1036_s20 = scalar_lea.vmem (!%p167_p9), [#allocation2], %s653_s12  ;;  %s1065_s19 = scalar_lea.sflag (!%p167_p9), [#allocation3], %s189_s11 }
  0x11   : > { %761 = vmatprep.subr.bf16.mxu1 (!%p167_p9), %v820_v3  ;;  %s587_s23 = sshll.u32 (!%p167_p9), %s1036_s20, 4  ;;  %s891_s5 = smov (!%p167_p9), [#allocation2]   ;;  %s1058_s23 = int_to_ptr.vmem [resolvable:$true] %s587_s23 }
  0x12   : > { %s827_s30 = scalar_lea.vmem (!%p167_p9), %s1058_s23, 2048  ;;  %s831_s6 = sshll.u32 (!%p167_p9), %s891_s5, 4  ;;  %s832_s6 = int_to_ptr.vmem [resolvable:$false] %s831_s6 }
  0x13   : > { %711 = vmatpush3.bf16.msra.mxu0 (!%p167_p9), %v818_v1  ;;  %p828_p11 = scmp.ne.s32.totalorder (!%p167_p9), %s1058_s23, %s827_s30  ;;  %s833_s7 = scalar_lea.vmem (!%p167_p9), %s832_s6, 4096 }
  0x14   : > { %728 = vmatprep.subr.bf16.mxu0 (!%p167_p9), %v819_v2  ;;  %769 = vmatpush3.bf16.msra.mxu1 (!%p167_p9), %v820_v3  ;;  %p834_p0 = scmp.lt.s32.totalorder (!%p167_p9), %s1058_s23, %s832_s6  ;;  %p835_p1 = scmp.lt.s32.totalorder (!%p167_p9), %s833_s7, %s827_s30 }
  0x15   : > { %s1118_s29 = smov (!%p193_p10, %s654_s29), 31  ;;  %762 = vmatprep.subr.bf16.mxu1 %v821_v4  ;;  %p829_p12 = pnand %p828_p11, %p957_p5 }
  0x16   : > { %s655_s10 = sshll.u32 %s1118_s29, 3  ;;  %s1056_s29 = scalar_lea.hbm %s1110_s4, %s681_s22 }
  0x17   : > { %s983_s13 = scalar_lea.vmem %s1106_s0, %s655_s10  ;;  %p830_p13 = pneg %p829_p12 }
  0x18   : > { %v200_v5 = vld [vmem:[%s983_s13] sm:$0xff]  ;;  %v201_v6 = vld [vmem:[%s983_s13 + $0x8] sm:$0xff]  ;;  %v202_v7 = vld [vmem:[%s983_s13 + $0x10] sm:$0xff]  ;;  %770 = vmatpush3.bf16.msra.mxu1 %v821_v4  ;;  %p836_p2 = por %p835_p1, %p834_p0 }
  0x19   : > { %v216_v8 = vpack.c.bf16 %v201_v6, %v200_v5  ;;  %v203_v9 = vld [vmem:[%s983_s13 + $0x18] sm:$0xff]  ;;  %v204_v10 = vld [vmem:[%s983_s13 + $0x20] sm:$0xff]  ;;  %v205_v11 = vld [vmem:[%s983_s13 + $0x28] sm:$0xff]  ;;  %763 = vmatprep.subr.bf16.mxu1 %v822_v16 }
  0x1a   : > { %v217_v12 = vpack.c.bf16 %v203_v9, %v202_v7  ;;  %v218_v13 = vpack.c.bf16 %v205_v11, %v204_v10  ;;  %v206_v14 = vld [vmem:[%s983_s13 + $0x30] sm:$0xff]  ;;  %v207_v15 = vld [vmem:[%s983_s13 + $0x38] sm:$0xff]  ;;  %v208_v17 = vld [vmem:[%s983_s13 + $0x40] sm:$0xff]  ;;  %p837_p3 = pnand %p836_p2, %p830_p13 }
  0x1b   : > { %712 = vmatprep.mubr.msk.bf16.mxu0 %vm245_vm0, %v216_v8  ;;  %v209_v18 = vld [vmem:[%s983_s13 + $0x48] sm:$0xff]  ;;  %v219_v19 = vpack.c.bf16 %v207_v15, %v206_v14  ;;  %v210_v22 = vld [vmem:[%s983_s13 + $0x50] sm:$0xff]  ;;  %v211_v23 = vld [vmem:[%s983_s13 + $0x58] sm:$0xff] }
  0x1c   : > { %713 = vmatmul.mubr.msk.bf16.vlgmr.msra.gmra.mrb[0].mxu0 %vm245_vm0, %v217_v12  ;;  %v220_v20 = vpack.c.bf16 %v209_v18, %v208_v17  ;;  %771 = vmatpush3.bf16.msra.mxu1 %v822_v16  ;;  %v212_v25 = vld [vmem:[%s983_s13 + $0x60] sm:$0xff]  ;;  %v213_v26 = vld [vmem:[%s983_s13 + $0x68] sm:$0xff]  ;;  %v221_v27 = vpack.c.bf16 %v211_v23, %v210_v22  ;;  %v214_v29 = vld [vmem:[%s983_s13 + $0x70] sm:$0xff] }
  0x1d   : > { %716 = vmatprep.mubr.msk.bf16.mxu0 %vm245_vm0, %v218_v13  ;;  %729 = vmatpush3.bf16.msra.mxu0 %v819_v2  ;;  %v222_v28 = vpack.c.bf16 %v213_v26, %v212_v25  ;;  %v215_v30 = vld [vmem:[%s983_s13 + $0x78] sm:$0xff] }
  0x1e   : > { %730 = vmatprep.subr.bf16.mxu0 %v820_v3  ;;  %764 = vmatprep.subr.bf16.mxu1 %v823_v21  ;;  %v223_v31 = vpack.c.bf16 %v215_v30, %v214_v29 }
  0x20   : > { %772 = vmatpush3.bf16.msra.mxu1 %v823_v21 }
  0x21   : > { %731 = vmatpush3.bf16.msra.mxu0 %v820_v3  ;;  %765 = vmatprep.subr.bf16.mxu1 %v824_v24 }
  0x22   : > { %732 = vmatprep.subr.bf16.mxu0 %v821_v4 }
  0x24   : > { %717 = vmatmul.mubr.msk.bf16.gmra.mrb[4].mxu0 %vm245_vm0, %v219_v19  ;;  %773 = vmatpush3.bf16.msra.mxu1 %v824_v24 }
  0x25   : > { %720 = vmatprep.mubr.msk.bf16.mxu0 %vm245_vm0, %v220_v20  ;;  %733 = vmatpush3.bf16.msra.mxu0 %v821_v4 }
  0x26   : > { %734 = vmatprep.subr.bf16.mxu0 %v822_v16  ;;  %766 = vmatprep.subr.bf16.mxu1 %v825_v32 }
  0x28   : > { %774 = vmatpush3.bf16.msra.mxu1 %v825_v32 }
  0x29   : > { %735 = vmatpush3.bf16.msra.mxu0 %v822_v16  ;;  %767 = vmatprep.subr.bf16.mxu1 %v826_v33 }
  0x2a   : > { %736 = vmatprep.subr.bf16.mxu0 %v823_v21 }
  0x2c   : > { %721 = vmatmul.mubr.msk.bf16.gmra.mrb[8].mxu0 %vm245_vm0, %v221_v27  ;;  %775 = vmatpush3.bf16.msra.mxu1 %v826_v33  ;;  %v667_v27 = vld [vmem:[%s1109_s3 + $0x1] ss:$0 sm:$0xff] }
  0x2d   : > { %724 = vmatprep.mubr.msk.bf16.mxu0 %vm245_vm0, %v222_v28  ;;  %737 = vmatpush3.bf16.msra.mxu0 %v823_v21 }
  0x2e   : > { %738 = vmatprep.subr.bf16.mxu0 %v824_v24 }
  0x31   : > { %739 = vmatpush3.bf16.msra.mxu0 %v824_v24 }
  0x32   : > { %740 = vmatprep.subr.bf16.mxu0 %v825_v32 }
  0x34   : > { %725 = vmatmul.mubr.msk.bf16.gmra.mrb[12].mxu0 %vm245_vm0, %v223_v31 }
  0x35   : > { %741 = vmatpush3.bf16.msra.mxu0 %v825_v32 }
  0x36   : > { %742 = vmatprep.subr.bf16.mxu0 %v826_v33 }
  0x39   : > { %743 = vmatpush3.bf16.msra.mxu0 %v826_v33 }
  0xef   : > { %v714_v35 = vpop.f32.mrb[0].mxu0 }
  0xf0   : > { %v313_v36 = vadd.f32 %v714_v35, %v656_v34  ;;  %v304_v37 = vpop.f32.mrb[1].mxu0 }
  0xf1   : > { %v305_v38 = vadd.f32 %v656_v34, %v304_v37  ;;  %v715_v39 = vpop.f32.mrb[2].mxu0 }
  0xf2   : > { %v316_v40 = vadd.f32 %v715_v39, %v656_v34  ;;  %v307_v41 = vpop.f32.mrb[3].mxu0  ;;  %v369_v43 = vmax.f32 %v313_v36, 0.0 }
  0xf3   : > { %v308_v42 = vadd.f32 %v656_v34, %v307_v41  ;;  %v367_v45 = vmax.f32 %v305_v38, 0.0 }
  0xf4   : > { %v370_v44 = vmax.f32 %v316_v40, 0.0 }
  0xf5   : > { %v368_v46 = vmax.f32 %v308_v42, 0.0 }
  0xf6   : > { %v384_v47 = vpack.c.bf16 %v370_v44, %v369_v43 }
  0xf7   : > { %v383_v48 = vpack.c.bf16 %v368_v46, %v367_v45  ;;  %v718_v49 = vpop.f32.mrb[4].mxu0 }
  0xf8   : > { %v329_v50 = vadd.f32 %v718_v49, %v656_v34  ;;  %v320_v51 = vpop.f32.mrb[5].mxu0 }
  0xf9   : > { %v321_v52 = vadd.f32 %v656_v34, %v320_v51  ;;  %v719_v53 = vpop.f32.mrb[6].mxu0  ;;  %744 = vmatprep.mubr.bf16.mxu0 %v383_v48 }
  0xfa   : > { %v332_v54 = vadd.f32 %v719_v53, %v656_v34  ;;  %v323_v55 = vpop.f32.mrb[7].mxu0  ;;  %745 = vmatmul.mubr.bf16.vlgmr.msra.gmra.mrb[16].mxu0 %v384_v47  ;;  %v373_v57 = vmax.f32 %v329_v50, 0.0 }
  0xfb   : > { %v324_v56 = vadd.f32 %v656_v34, %v323_v55  ;;  %v371_v59 = vmax.f32 %v321_v52, 0.0 }
  0xfc   : > { %v374_v58 = vmax.f32 %v332_v54, 0.0 }
  0xfd   : > { %v372_v60 = vmax.f32 %v324_v56, 0.0 }
  0xfe   : > { %v386_v61 = vpack.c.bf16 %v374_v58, %v373_v57 }
  0xff   : > { %v722_v62 = vpop.f32.mrb[8].mxu0  ;;  %v385_v63 = vpack.c.bf16 %v372_v60, %v371_v59 }
 0x100   : > { %v345_v0 = vadd.f32 %v722_v62, %v656_v34  ;;  %v336_v1 = vpop.f32.mrb[9].mxu0 }
 0x101   : > { %v337_v2 = vadd.f32 %v656_v34, %v336_v1  ;;  %v723_v3 = vpop.f32.mrb[10].mxu0  ;;  %748 = vmatprep.mubr.bf16.mxu1 %v385_v63 }
 0x102   : > { %v348_v4 = vadd.f32 %v723_v3, %v656_v34  ;;  %v339_v5 = vpop.f32.mrb[11].mxu0  ;;  %749 = vmatmul.mubr.bf16.vlgmr.msra.gmra.mrb[0].mxu1 %v386_v61  ;;  %v377_v7 = vmax.f32 %v345_v0, 0.0 }
 0x103   : > { %v340_v6 = vadd.f32 %v656_v34, %v339_v5  ;;  %v375_v9 = vmax.f32 %v337_v2, 0.0 }
 0x104   : > { %v378_v8 = vmax.f32 %v348_v4, 0.0 }
 0x105   : > { %v376_v10 = vmax.f32 %v340_v6, 0.0 }
 0x106   : > { %v388_v11 = vpack.c.bf16 %v378_v8, %v377_v7 }
 0x107   : > { %v387_v12 = vpack.c.bf16 %v376_v10, %v375_v9  ;;  %v726_v13 = vpop.f32.mrb[12].mxu0 }
 0x108   : > { %v361_v14 = vadd.f32 %v726_v13, %v656_v34  ;;  %v352_v15 = vpop.f32.mrb[13].mxu0 }
 0x109   : > { %v353_v16 = vadd.f32 %v656_v34, %v352_v15  ;;  %v727_v17 = vpop.f32.mrb[14].mxu0  ;;  %752 = vmatprep.mubr.bf16.mxu1 %v387_v12 }
 0x10a   : > { %v364_v18 = vadd.f32 %v727_v17, %v656_v34  ;;  %v355_v19 = vpop.f32.mrb[15].mxu0  ;;  %753 = vmatmul.mubr.bf16.gmra.mrb[4].mxu1 %v388_v11  ;;  %v381_v21 = vmax.f32 %v361_v14, 0.0 }
 0x10b   : > { %v356_v20 = vadd.f32 %v656_v34, %v355_v19  ;;  %v379_v23 = vmax.f32 %v353_v16, 0.0 }
 0x10c   : > { %v382_v22 = vmax.f32 %v364_v18, 0.0 }
 0x10d   : > { %v380_v24 = vmax.f32 %v356_v20, 0.0 }
 0x10e   : > { %v390_v25 = vpack.c.bf16 %v382_v22, %v381_v21 }
 0x10f   : > { %v389_v26 = vpack.c.bf16 %v380_v24, %v379_v23 }
 0x111   : > { %756 = vmatprep.mubr.bf16.mxu1 %v389_v26 }
 0x112   : > { %757 = vmatmul.mubr.bf16.gmra.mrb[8].mxu1 %v390_v25 }
 0x1cd   : > { %v746_v28 = vpop.f32.mrb[16].mxu0 }
 0x1ce   : > { %v503_v29 = vadd.f32 %v746_v28, %v667_v27  ;;  %v494_v30 = vpop.f32.mrb[17].mxu0 }
 0x1cf   : > { %v495_v31 = vadd.f32 %v667_v27, %v494_v30  ;;  %v747_v32 = vpop.f32.mrb[18].mxu0 }
 0x1d0   : > { %559 = vst [vmem:[%s1036_s20 + $0x10] sm:$0xff] %v503_v29  ;;  %v506_v33 = vadd.f32 %v747_v32, %v667_v27  ;;  %v497_v34 = vpop.f32.mrb[19].mxu0 }
 0x1d1   : > { %557 = vst [vmem:[%s1036_s20] sm:$0xff] %v495_v31  ;;  %v498_v35 = vadd.f32 %v667_v27, %v497_v34 }
 0x1d2   : > { %560 = vst [vmem:[%s1036_s20 + $0x18] sm:$0xff] %v506_v33 }
 0x1d3   : > { %558 = vst [vmem:[%s1036_s20 + $0x8] sm:$0xff] %v498_v35 }
 0x1d5   : > { %v750_v36 = vpop.f32.mrb[0].mxu1 }
 0x1d6   : > { %v519_v37 = vadd.f32 %v750_v36, %v667_v27  ;;  %v510_v38 = vpop.f32.mrb[1].mxu1 }
 0x1d7   : > { %v511_v39 = vadd.f32 %v667_v27, %v510_v38  ;;  %v751_v40 = vpop.f32.mrb[2].mxu1 }
 0x1d8   : > { %563 = vst [vmem:[%s1036_s20 + $0x30] sm:$0xff] %v519_v37  ;;  %v522_v41 = vadd.f32 %v751_v40, %v667_v27  ;;  %v513_v42 = vpop.f32.mrb[3].mxu1 }
 0x1d9   : > { %561 = vst [vmem:[%s1036_s20 + $0x20] sm:$0xff] %v511_v39  ;;  %v514_v43 = vadd.f32 %v667_v27, %v513_v42 }
 0x1da   : > { %564 = vst [vmem:[%s1036_s20 + $0x38] sm:$0xff] %v522_v41 }
 0x1db   : > { %562 = vst [vmem:[%s1036_s20 + $0x28] sm:$0xff] %v514_v43 }
 0x1dd   : > { %v754_v44 = vpop.f32.mrb[4].mxu1 }
 0x1de   : > { %v535_v45 = vadd.f32 %v754_v44, %v667_v27  ;;  %v526_v46 = vpop.f32.mrb[5].mxu1 }
 0x1df   : > { %v527_v47 = vadd.f32 %v667_v27, %v526_v46  ;;  %v755_v48 = vpop.f32.mrb[6].mxu1 }
 0x1e0   : > { %567 = vst [vmem:[%s1036_s20 + $0x50] sm:$0xff] %v535_v45  ;;  %v538_v49 = vadd.f32 %v755_v48, %v667_v27  ;;  %v529_v50 = vpop.f32.mrb[7].mxu1 }
 0x1e1   : > { %565 = vst [vmem:[%s1036_s20 + $0x40] sm:$0xff] %v527_v47  ;;  %v530_v51 = vadd.f32 %v667_v27, %v529_v50 }
 0x1e2   : > { %568 = vst [vmem:[%s1036_s20 + $0x58] sm:$0xff] %v538_v49 }
 0x1e3   : > { %566 = vst [vmem:[%s1036_s20 + $0x48] sm:$0xff] %v530_v51 }
 0x1e5   : > { %v758_v52 = vpop.f32.mrb[8].mxu1 }
 0x1e6   : > { %v551_v53 = vadd.f32 %v758_v52, %v667_v27  ;;  %v542_v54 = vpop.f32.mrb[9].mxu1 }
 0x1e7   : > { %v543_v55 = vadd.f32 %v667_v27, %v542_v54  ;;  %v759_v56 = vpop.f32.mrb[10].mxu1 }
 0x1e8   : > { %571 = vst [vmem:[%s1036_s20 + $0x70] sm:$0xff] %v551_v53  ;;  %v554_v57 = vadd.f32 %v759_v56, %v667_v27  ;;  %v545_v58 = vpop.f32.mrb[11].mxu1 }
 0x1e9   : > { %569 = vst [vmem:[%s1036_s20 + $0x60] sm:$0xff] %v543_v55  ;;  %v546_v59 = vadd.f32 %v667_v27, %v545_v58 }
 0x1ea   : > { %572 = vst [vmem:[%s1036_s20 + $0x78] sm:$0xff] %v554_v57 }
 0x1eb   : > { %570 = vst [vmem:[%s1036_s20 + $0x68] sm:$0xff] %v546_v59 }
 0x1ec   : > { %840 = shalt.err (!%p837_p3)
}
 0x1ed   : > { %s841_s8 = scalar_lea.hbm %s1056_s29, 2048  ;;  %s845_s11 = scalar_lea.hbm %s1110_s4, 4096 }
 0x1ee   : > { %p842_p4 = scmp.ne.s32.totalorder %s1056_s29, %s841_s8  ;;  %p846_p9 = scmp.lt.u32.totalorder %s1056_s29, %s1110_s4 }
 0x1ef   : > { %p847_p10 = scmp.lt.u32.totalorder %s845_s11, %s841_s8  ;;  %p849_p12 = scmp.lt.u32.totalorder %s841_s8, %s1056_s29 }
 0x1f0   : > { %p843_p7 = pnand %p842_p4, %p957_p5 }
 0x1f1   : > { %p848_p11 = por %p847_p10, %p846_p9 }
 0x1f2   : > { %p844_p8 = pneg %p843_p7 }
 0x1f3   : > { %p850_p13 = por %p849_p12, %p848_p11 }
 0x1f5   : > { %p851_p0 = pnand %p850_p13, %p844_p8 }
 0x1f7   : > { %854 = shalt.err (!%p851_p0)
}
 0x1f8   : > { %s892_s14 = smov 128   ;;  %s893_s20 = smov 8  }
 0x1f9   : > { %776 = dma.vmem_to_hbm [thread:$0]  (%p957_p5), %s1058_s23, 2048, %s1056_s29, %s1065_s19, %s892_s14, %s892_s14, %s893_s20  }
 0x1fa PF: > { %p782_p1 = scmp.ge.s32.totalorder %s889_s18, 2  ;;  %s602_s22 = sand.u32 1, %s877_s15  }
 0x1fb   : > { %s603_s27 = scalar_lea.sflag [#allocation3], %s602_s22 }
 0x1fc   : > { %p779_p2 = pnand %p782_p1, %p961_p6 }
 0x1fe   : > { %872 = dma.done.wait (!%p779_p2), %s603_s27, 2048  }
 0x1ff   : > { %874 = vsyncadd (!%p779_p2), %s603_s27, 4294965248  ;;  %p14_p3 = scmp.ge.s32.totalorder %s944_s21, 4   ;;  %s1113_s15 = smov %s881_s16 }
 0x200   : > { %s1114_s16 = smov %s885_s17  ;;  %s1115_s17 = smov %s955_s24 }
 0x201   : > { %s1116_s18 = smov %s944_s21  ;;  %16 = sbr.rel (!%p14_p3) target bundleno = 3 (0x3), region = 71 }
 0x208   :  { %608 = vsyncpa [#allocation3], 1 }
 0x209   :  { %610 = vsyncpa [#allocation3 + $0x1], 1 }

</bundles_post_ra>
